<compile_context>
chip_gen: v7x
topology: tpu7x:2x2x1
jax: 0.10.0
libtpu: 0.0.40
codegen_flags: <defaults>
</compile_context>

<pallas_src>
import jax
import jax.numpy as jnp
from jax.experimental import pallas as pl
from jax.experimental.pallas import tpu as pltpu


_LANES = 128          # TPU lane width
_TR_CAP = 4096        # max packed rows per tile (= 32768 samples, 2 MiB @ f32)
_SMALL_BATCH = 256    # below this, a fused XLA op beats any kernel launch


def _genres_ae_kernel(w_ref, b_ref, x_ref, o_ref):
    # w_ref: (128, 128) block-diagonal folded weight (P copies of W_fold)
    # b_ref: (1, 128)   tiled folded bias (kept f32)
    # x_ref: (TR, 128)  packed input tile: each row holds P samples' features
    # o_ref: (TR, 128)  packed output tile, lane-dense
    y = jnp.dot(x_ref[...], w_ref[...], preferred_element_type=jnp.float32)
    y = y + b_ref[...]
    o_ref[...] = jnp.maximum(y, 0.0).astype(o_ref.dtype)


def _cdiv(a, b):
    return -(-a // b)


def _choose_row_tiling(rows):
    """rows = number of packed 128-lane rows.  Returns (rows_pad, tile_rows, n_tiles)."""
    n_tiles = _cdiv(rows, _TR_CAP)
    if rows >= 16:
        # Give v7x's two TensorCores independent tiles when there's enough work.
        n_tiles = max(n_tiles, 2)
    tr = _cdiv(_cdiv(rows, n_tiles), 8) * 8          # sublane-aligned tile rows
    rows_pad = tr * n_tiles
    return rows_pad, tr, n_tiles


def genres_ae_forward(x, w1, b1, w2, b2):
    """x: (B, G), w1: (G, H), b1: (1, H), w2: (H, G), b2: (1, G) -> (B, G).

    Weights are (in_features, out_features) (PyTorch nn.Linear weight
    transposed); biases are row vectors.
    """
    B, G = x.shape
    out_dtype = x.dtype

    # ---- Fold the two linear layers (inference: dropout == identity). ----
    w_fold = jnp.dot(w1.astype(jnp.float32), w2.astype(jnp.float32))                 # (G, G)
    b_fold = jnp.dot(b1.astype(jnp.float32), w2.astype(jnp.float32)) + b2.astype(jnp.float32)  # (1, G)

    # ---- Small-batch / non-packable fast path: one fused XLA op. ----
    if B < _SMALL_BATCH or (_LANES % G != 0):
        y = jnp.maximum(jnp.dot(x.astype(jnp.float32), w_fold) + b_fold, 0.0)
        return y.astype(out_dtype)

    # ---- Packed lane-dense path. ----
    P = _LANES // G                                   # samples packed per 128-lane row
    kdtype = jnp.bfloat16 if x.dtype == jnp.bfloat16 else jnp.float32

    rows = _cdiv(B, P)                                # packed rows needed
    rows_pad, tr, n_tiles = _choose_row_tiling(rows)
    B_pad = rows_pad * P

    x_c = x.astype(kdtype)
    if B_pad != B:
        x_c = jnp.pad(x_c, ((0, B_pad - B), (0, 0)))  # only pass over x when padding is needed
    # Row-major view: (B_pad, G) -> (rows_pad, P*G).  No data movement.
    xp = x_c.reshape(rows_pad, P * G)

    # Block-diagonal expansion of the folded weight: one matmul handles P samples/row.
    w_big = jnp.kron(jnp.eye(P, dtype=jnp.float32), w_fold).astype(kdtype)   # (128, 128)
    b_big = jnp.tile(b_fold, (1, P)).astype(jnp.float32)                     # (1, 128), f32 add is free

    out_p = pl.pallas_call(
        _genres_ae_kernel,
        out_shape=jax.ShapeDtypeStruct((rows_pad, P * G), kdtype),
        grid=(n_tiles,),
        in_specs=[
            pl.BlockSpec((P * G, P * G), lambda i: (0, 0)),   # folded weight, resident
            pl.BlockSpec((1, P * G), lambda i: (0, 0)),       # folded bias, resident
            pl.BlockSpec((tr, P * G), lambda i: (i, 0)),      # packed input tile
        ],
        out_specs=pl.BlockSpec((tr, P * G), lambda i: (i, 0)),
        compiler_params=pltpu.CompilerParams(
            dimension_semantics=("parallel",),
        ),
    )(w_big, b_big, xp)

    # Free row-major view back to (B_pad, G); slice off padding if any.
    out = out_p.reshape(B_pad, G)
    if B_pad != B:
        out = out[:B]
    return out.astype(out_dtype)


if __name__ == "__main__":
    # Config consistent with the module: genre_size=16, hid_dim=32.
    genre_size = 16
    hid_dim = 32

    key = jax.random.PRNGKey(0)
    kx, kw1, kb1, kw2, kb2 = jax.random.split(key, 5)

    # Deterministic parameter init (uniform, roughly matching nn.Linear scale).
    lim1 = 1.0 / (genre_size ** 0.5)
    w1 = jax.random.uniform(kw1, (genre_size, hid_dim), jnp.float32, -lim1, lim1)
    b1 = jax.random.uniform(kb1, (1, hid_dim), jnp.float32, -lim1, lim1)
    lim2 = 1.0 / (hid_dim ** 0.5)
    w2 = jax.random.uniform(kw2, (hid_dim, genre_size), jnp.float32, -lim2, lim2)
    b2 = jax.random.uniform(kb2, (1, genre_size), jnp.float32, -lim2, lim2)

    def ref_fn(xin):
        return jnp.maximum((xin.astype(jnp.float32) @ w1 + b1) @ w2 + b2, 0.0)

    # 1) Small batch -> fused XLA fast path.
    x_small = jax.random.normal(kx, (8, genre_size), dtype=jnp.float32)
    out_small = jax.block_until_ready(genres_ae_forward(x_small, w1, b1, w2, b2))
    assert out_small.shape == (8, genre_size)
    assert jnp.allclose(out_small, ref_fn(x_small), atol=1e-4, rtol=1e-4), (
        f"small-batch max abs err {jnp.max(jnp.abs(out_small - ref_fn(x_small)))}"
    )

    # 2) Larger batch -> Pallas packed lane-dense kernel (f32 I/O).
    batch = 2048
    x_big = jax.random.normal(kx, (batch, genre_size), dtype=jnp.float32)
    out_big = jax.block_until_ready(genres_ae_forward(x_big, w1, b1, w2, b2))
    assert out_big.shape == (batch, genre_size)
    assert jnp.allclose(out_big, ref_fn(x_big), atol=1e-4, rtol=1e-4), (
        f"pallas f32 max abs err {jnp.max(jnp.abs(out_big - ref_fn(x_big)))}"
    )

    # 3) Same batch in bf16 -> bf16 kernel I/O, f32 accumulation.
    x_bf16 = x_big.astype(jnp.bfloat16)
    out_bf16 = jax.block_until_ready(genres_ae_forward(x_bf16, w1, b1, w2, b2))
    assert out_bf16.dtype == jnp.bfloat16
    assert jnp.allclose(out_bf16.astype(jnp.float32), ref_fn(x_big), atol=6e-2, rtol=6e-2), (
        f"pallas bf16 max abs err {jnp.max(jnp.abs(out_bf16.astype(jnp.float32) - ref_fn(x_big)))}"
    )

    print("KERNEL_OK")
</pallas_src>

<mosaic_0001>
module attributes {stable_mosaic.version = 11 : i64} {
  func.func @_genres_ae_kernel(%arg0: i32, %arg1: memref<128x128xf32, #tpu.memory_space<vmem>>, %arg2: memref<1x128xf32, #tpu.memory_space<vmem>>, %arg3: memref<128x128xf32, #tpu.memory_space<vmem>>, %arg4: memref<128x128xf32, #tpu.memory_space<vmem>>) attributes {dimension_semantics = [#tpu.dimension_semantics<parallel>], iteration_bounds = array<i64: 2>, scalar_prefetch = 0 : i64, scratch_operands = 0 : i64, tpu.core_type = #tpu.core_type<tc>, window_params = [{pipeline_mode = #tpu.pipeline_mode<synchronous>, transform_indices = @transform_0, window_bounds = array<i64: 128, 128>}, {pipeline_mode = #tpu.pipeline_mode<synchronous>, transform_indices = @transform_1, window_bounds = array<i64: 1, 128>}, {transform_indices = @transform_2, window_bounds = array<i64: 128, 128>}, {transform_indices = @transform_3, window_bounds = array<i64: 128, 128>}]} {
    %c0 = arith.constant 0 : index
    %c0_0 = arith.constant 0 : index
    %0 = vector.load %arg3[%c0, %c0_0] : memref<128x128xf32, #tpu.memory_space<vmem>>, vector<128x128xf32>
    %c0_1 = arith.constant 0 : index
    %c0_2 = arith.constant 0 : index
    %1 = vector.load %arg1[%c0_1, %c0_2] : memref<128x128xf32, #tpu.memory_space<vmem>>, vector<128x128xf32>
    %cst = arith.constant dense<0.000000e+00> : vector<128x128xf32>
    %2 = tpu.matmul %0, %1, %cst {dimension_numbers = #tpu.dot_dimension_numbers<[1], [0], [0], [1], [0, 0, 1, 1], [], []>} : vector<128x128xf32>, vector<128x128xf32>, vector<128x128xf32> -> vector<128x128xf32>
    %c0_3 = arith.constant 0 : index
    %c0_4 = arith.constant 0 : index
    %3 = vector.load %arg2[%c0_3, %c0_4] : memref<1x128xf32, #tpu.memory_space<vmem>>, vector<1x128xf32>
    %4 = vector.broadcast %3 : vector<1x128xf32> to vector<128x128xf32>
    %5 = arith.addf %2, %4 : vector<128x128xf32>
    %cst_5 = arith.constant 0.000000e+00 : f32
    %6 = vector.broadcast %cst_5 : f32 to vector<128x128xf32>
    %7 = arith.maximumf %5, %6 : vector<128x128xf32>
    %c0_6 = arith.constant 0 : index
    %c0_7 = arith.constant 0 : index
    %8 = vector.load %arg4[%c0_6, %c0_7] : memref<128x128xf32, #tpu.memory_space<vmem>>, vector<128x128xf32>
    tpu.vector_store %arg4[%c0_6, %c0_7], %7 {strides = array<i32>} : memref<128x128xf32, #tpu.memory_space<vmem>>, vector<128x128xf32>,
    return
  }
  func.func @transform_0(%arg0: i32) -> (i32, i32) {
    %c0_i32 = arith.constant 0 : i32
    %c0_i32_0 = arith.constant 0 : i32
    %c0_i32_1 = arith.constant 0 : i32
    return %c0_i32, %c0_i32_0 : i32, i32
  }
  func.func @transform_1(%arg0: i32) -> (i32, i32) {
    %c0_i32 = arith.constant 0 : i32
    %c0_i32_0 = arith.constant 0 : i32
    %c0_i32_1 = arith.constant 0 : i32
    return %c0_i32, %c0_i32_0 : i32, i32
  }
  func.func @transform_2(%arg0: i32) -> (i32, i32) {
    %c0_i32 = arith.constant 0 : i32
    %c0_i32_0 = arith.constant 0 : i32
    return %arg0, %c0_i32 : i32, i32
  }
  func.func @transform_3(%arg0: i32) -> (i32, i32) {
    %c0_i32 = arith.constant 0 : i32
    %c0_i32_0 = arith.constant 0 : i32
    return %arg0, %c0_i32 : i32, i32
  }
}

</mosaic_0001>

<bundles_post_ra>
// kernel: tpu_custom_call.1
= control target key start
LH: loop header
LB: loop body
LE: loop exit
PB: predicated region body
PF: predicated region fallthrough
CT: control target
= control target key end

     0   :  { %8 = vsyncpa [#allocation3], 0  ;;  %s1145_s0 = inlined_call_operand.hbm [shape: f32[128,128], index: 0, kind: input, shape index: {}]   ;;  %s1146_s1 = inlined_call_operand.vmem [shape: f32[1,128], index: 1, kind: input, shape index: {}]   ;;  %s1147_s2 = inlined_call_operand.hbm [shape: f32[256,128], index: 2, kind: input, shape index: {}]   ;;  %s1148_s3 = inlined_call_operand.hbm [shape: f32[256,128], index: 3, kind: output, shape index: {}]  }
   0x1   :  { %9 = vsyncpa [#allocation6], 0 }
   0x2   :  { %11 = vsyncpa [#allocation6 + $0x1], 0 }
   0x3   :  { %12 = vsyncpa [#allocation4], 0 }
   0x4   :  { %14 = vsyncpa [#allocation4 + $0x1], 0  ;;  %s894_s12 = smov 0   ;;  %s896_s13 = smov 0  }
   0x5   :  { %s898_s14 = smov 0   ;;  %s900_s15 = smov 0  }
   0x6 LB: > { %s915_s16 = sadd.s32 4294967295, %s865_s15   ;;  %s521_s17 = sadd.s32 4294967294, %s865_s15   ;;  %s865_s15 = sphi %s900_s15, %s1168_s15   ;;  %s861_s14 = sphi %s898_s14, %s1167_s14   ;;  %s857_s13 = sphi %s896_s13, %s1166_s13   ;;  %s853_s12 = sphi %s894_s12, %s1165_s12  }
   0x7   : > { %p82_p0 = scmp.ne.s32.totalorder %s857_s13, %s853_s12  ;;  %p1149_p1 = scmp.eq.s32.totalorder %s915_s16, 0 }
   0x8   : > { %p112_p3 = scmp.eq.s32.totalorder %s521_s17, 1  ;;  %p522_p5 = scmp.ge.s32.totalorder %s865_s15, 1 }
   0x9   : > { %p924_p4 = por %p1149_p1, %p82_p0  ;;  %p119_p7 = scmp.lt.s32.totalorder %s865_s15, 3 }
   0xa   : > { %p929_p6 = por %p112_p3, %p82_p0  ;;  %s867_s21 = smov [#allocation2]  }
   0xb   : > { %s1152_s18 = scalar_select %p924_p4, 1, 0 }
   0xc   : > { %s1153_s19 = scalar_select %p929_p6, 1, 0 }
   0xd   : > { %p934_p8 = pnand %p522_p5, %p119_p7  ;;  %s131_s22 = sshll.u32 %s867_s21, 4  ;;  %s938_s22 = int_to_ptr.vmem [resolvable:$true] %s131_s22 }
   0xe   : > { %s950_s24 = sadd.s32 1, %s865_s15   ;;  %s69_s25 = sadd.s32 1, %s861_s14 }
   0xf   : > { %s1154_s20 = scalar_select %p934_p8, 1, 0 }
  0x10   : > { %p684_p9 = pneg %p934_p8  ;;  %s66_s26 = ssub.s32 %s865_s15, %s950_s24 }
  0x11   : > { %s737_s29 = scalar_lea.hbm %s1145_s0, 2048 }
  0x12   : > { %p945_p11 = pnand %p684_p9, %p1149_p1  ;;  %p738_p12 = scmp.ne.s32.totalorder %s1145_s0, %s737_s29 }
  0x13   : > { %p744_p5 = scmp.lt.u32.totalorder %s737_s29, %s1145_s0 }
  0x14   : > { %p739_p13 = pneg %p945_p11 }
  0x16   : > { %p740_p0 = pnand %p739_p13, %p738_p12 }
  0x18   : > { %p741_p3 = pneg %p740_p0 }
  0x1a   : > { %p746_p7 = pnand %p744_p5, %p741_p3 }
  0x1c   : > { %749 = shalt.err (!%p746_p7)
}
  0x1d   : > { %s750_s7 = scalar_lea.vmem %s938_s22, 2048  ;;  %p758_p2 = scmp.lt.s32.totalorder %s938_s22, %s938_s22 }
  0x1e   : > { %p751_p9 = scmp.ne.s32.totalorder %s938_s22, %s750_s7  ;;  %p759_p6 = scmp.lt.s32.totalorder %s750_s7, %s750_s7 }
  0x20   : > { %p753_p10 = pnand %p751_p9, %p739_p13  ;;  %p760_p4 = por %p759_p6, %p758_p2 }
  0x22   : > { %p754_p1 = pneg %p753_p10 }
  0x24   : > { %p761_p8 = pnand %p760_p4, %p754_p1 }
  0x26   : > { %764 = shalt.err (!%p761_p8)
}
  0x27   : > { %s868_s8 = smov 128   ;;  %s869_s9 = smov 8  }
  0x28   : > { %687 = dma.hbm_to_vmem [thread:$0]  (!%p945_p11), %s1145_s0, 2048, %s938_s22, [#allocation3], %s868_s8, %s868_s8, %s869_s9  }
  0x29   : > { %p67_p1 = scmp.eq.s32.totalorder %s66_s26, 0  ;;  %p76_p2 = scmp.ne.s32.totalorder %s861_s14, %s857_s13 }
  0x2a   : > { %p77_p4 = scmp.eq.s32.totalorder %s865_s15, 0  ;;  %p697_p6 = scmp.lt.s32.totalorder %s865_s15, 2 }
  0x2b   : > { %s984_s17 = scalar_select %p67_p1, %s861_s14, %s69_s25  }
  0x2c   : > { %p78_p8 = por %p77_p4, %p76_p2  ;;  %p1156_p10 = scmp.eq.s32.totalorder %s915_s16, 1 }
  0x2d   : > { %s148_s23 = sand.u32 1, %s861_s14   ;;  %s538_s27 = sshll.u32 %s865_s15, 11 }
  0x2e   : > { %p988_p12 = por %p1156_p10, %p76_p2  ;;  %s525_s28 = sshll.u32 %s148_s23, 7 }
  0x2f   : > { %s997_s4 = scalar_lea.hbm %s1147_s2, %s538_s27  ;;  %s152_s22 = scalar_lea.vmem [#allocation5], %s525_s28 }
  0x30   : > { %s159_s25 = sshll.u32 %s152_s22, 4  ;;  %p999_p11 = pnand %p697_p6, %p78_p8  ;;  %s1003_s25 = int_to_ptr.vmem [resolvable:$true] %s159_s25 }
  0x31   : > { %s1005_s5 = scalar_lea.sflag [#allocation6], %s148_s23  ;;  %s765_s6 = scalar_lea.hbm %s997_s4, 2048 }
  0x32   : > { %p766_p13 = scmp.ne.s32.totalorder %s997_s4, %s765_s6  ;;  %p767_p0 = pneg %p999_p11 }
  0x33   : > { %s770_s11 = scalar_lea.hbm %s1147_s2, 4096  ;;  %p771_p7 = scmp.lt.u32.totalorder %s997_s4, %s1147_s2 }
  0x34   : > { %p768_p3 = pnand %p767_p0, %p766_p13  ;;  %p772_p9 = scmp.lt.u32.totalorder %s770_s11, %s765_s6 }
  0x35   : > { %p774_p2 = scmp.lt.u32.totalorder %s765_s6, %s997_s4 }
  0x36   : > { %p769_p5 = pneg %p768_p3  ;;  %p773_p1 = por %p772_p9, %p771_p7 }
  0x38   : > { %p775_p4 = por %p774_p2, %p773_p1 }
  0x3a   : > { %p776_p6 = pnand %p775_p4, %p769_p5 }
  0x3c   : > { %779 = shalt.err (!%p776_p6)
}
  0x3d   : > { %s780_s23 = scalar_lea.vmem %s1003_s25, 2048  ;;  %s870_s29 = smov [#allocation5]  }
  0x3e   : > { %p781_p8 = scmp.ne.s32.totalorder %s1003_s25, %s780_s23  ;;  %s785_s30 = sshll.u32 %s870_s29, 4  ;;  %s786_s30 = int_to_ptr.vmem [resolvable:$false] %s785_s30 }
  0x3f   : > { %s787_s22 = scalar_lea.vmem %s786_s30, 4096  ;;  %p788_p3 = scmp.lt.s32.totalorder %s1003_s25, %s786_s30 }
  0x40   : > { %p783_p10 = pnand %p781_p8, %p767_p0  ;;  %p789_p7 = scmp.lt.s32.totalorder %s787_s22, %s780_s23 }
  0x42   : > { %p784_p13 = pneg %p783_p10  ;;  %p790_p9 = por %p789_p7, %p788_p3 }
  0x44   : > { %p791_p1 = pnand %p790_p9, %p784_p13 }
  0x46   : > { %794 = shalt.err (!%p791_p1)
}
  0x47   : > { %691 = dma.hbm_to_vmem [thread:$0]  (!%p999_p11), %s997_s4, 2048, %s1003_s25, %s1005_s5, %s868_s8, %s868_s8, %s869_s9  }
  0x48   : > { %p1159_p0 = scmp.ne.s32.totalorder %s1154_s20, 0 }
  0x49   : > { %p1160_p5 = scmp.eq.s32.totalorder (!%p1159_p0), %s915_s16, 0 }
  0x4a   : > { %171 = sbr.rel (%p1159_p0) target bundleno = 365 (0x16d), region = 32 }
  0x51   : > { %840 = dma.done.wait (%p1160_p5), [#allocation3], 2048   ;;  %p1161_p2 = pmov %p1160_p5 }
  0x52   : > { %s1043_s6 = sand.u32 1, %s857_s13   ;;  %p1162_p11 = scmp.ne.s32.totalorder %s1152_s18, 0 }
  0x53   : > { %842 = vsyncadd (%p1161_p2), [#allocation3], 4294965248  ;;  %s530_s26 = sshll.u32 %s1043_s6, 7  ;;  %s178_s7 = scalar_lea.sflag [#allocation6], %s1043_s6 }
  0x54   : > { %s1049_s8 = scalar_lea.vmem [#allocation5], %s530_s26 }
  0x55   : > { %844 = dma.done.wait (%p1162_p11), %s178_s7, 2048  }
  0x56   : > { %846 = vsyncadd (%p1162_p11), %s178_s7, 4294965248  ;;  %v222_v0 = vld [vmem:[#allocation2] sm:$0xff]  ;;  %v223_v1 = vld [vmem:[#allocation2 + $0x8] sm:$0xff]  ;;  %s1076_s9 = scalar_lea.vmem [#allocation7], %s530_s26  ;;  %s539_s4 = sshll.u32 %s915_s16, 11 }
  0x57   : > { %v224_v2 = vld [vmem:[#allocation2 + $0x10] sm:$0xff]  ;;  %v628_v3 = vpack.c.bf16 %v223_v1, %v222_v0  ;;  %v225_v4 = vld [vmem:[#allocation2 + $0x18] sm:$0xff]  ;;  %v226_v6 = vld [vmem:[#allocation2 + $0x20] sm:$0xff]  ;;  %s436_s25 = sshll.u32 %s1076_s9, 4  ;;  %s1095_s10 = scalar_lea.hbm %s1148_s3, %s539_s4  ;;  %s1097_s25 = int_to_ptr.vmem [resolvable:$true] %s436_s25 }
  0x58   : > { %v632_v5 = vpack.c.bf16 %v225_v4, %v224_v2  ;;  %v227_v7 = vld [vmem:[#allocation2 + $0x28] sm:$0xff]  ;;  %v206_v9 = vld [vmem:[%s1049_s8] sm:$0xff]  ;;  %v228_v11 = vld [vmem:[#allocation2 + $0x30] sm:$0xff]  ;;  %s423_s11 = scalar_lea.sflag [#allocation4], %s1043_s6  ;;  %s795_s27 = scalar_lea.vmem %s1097_s25, 2048 }
  0x59   : > { %629 = vmatprep.subr.bf16.mxu0 %v628_v3  ;;  %660 = vmatprep.subr.bf16.mxu1 %v628_v3  ;;  %v636_v8 = vpack.c.bf16 %v227_v7, %v226_v6  ;;  %v214_v10 = vld [vmem:[%s1049_s8 + $0x40] sm:$0xff]  ;;  %v229_v12 = vld [vmem:[#allocation2 + $0x38] sm:$0xff]  ;;  %v231_v15 = vld [vmem:[#allocation2 + $0x48] sm:$0xff]  ;;  %p796_p4 = scmp.ne.s32.totalorder %s1097_s25, %s795_s27  ;;  %s871_s28 = smov [#allocation7]  }
  0x5a   : > { %631 = vmatpush3.bf16.msra.mxu0 %v628_v3  ;;  %668 = vmatpush3.bf16.msra.mxu1 %v628_v3  ;;  %v640_v13 = vpack.c.bf16 %v229_v12, %v228_v11  ;;  %v230_v14 = vld [vmem:[#allocation2 + $0x40] sm:$0xff]  ;;  %v232_v17 = vld [vmem:[#allocation2 + $0x50] sm:$0xff]  ;;  %v233_v18 = vld [vmem:[#allocation2 + $0x58] sm:$0xff]  ;;  %s799_s23 = sshll.u32 %s871_s28, 4  ;;  %s800_s23 = int_to_ptr.vmem [resolvable:$false] %s799_s23 }
  0x5b   : > { %633 = vmatprep.subr.bf16.mxu0 %v632_v5  ;;  %661 = vmatprep.subr.bf16.mxu1 %v632_v5  ;;  %v644_v16 = vpack.c.bf16 %v231_v15, %v230_v14  ;;  %v648_v19 = vpack.c.bf16 %v233_v18, %v232_v17  ;;  %v234_v20 = vld [vmem:[#allocation2 + $0x60] sm:$0xff]  ;;  %v235_v21 = vld [vmem:[#allocation2 + $0x68] sm:$0xff]  ;;  %v236_v23 = vld [vmem:[#allocation2 + $0x70] sm:$0xff]  ;;  %p797_p6 = pnand %p796_p4, %p988_p12  ;;  %s801_s29 = scalar_lea.vmem %s800_s23, 4096 }
  0x5c   : > { %604 = vmatprep.mubr.f32.mxu0 %v206_v9  ;;  %616 = vmatprep.mubr.f32.mxu1 %v214_v10  ;;  %v652_v22 = vpack.c.bf16 %v235_v21, %v234_v20  ;;  %v237_v24 = vld [vmem:[#allocation2 + $0x78] sm:$0xff]  ;;  %v207_v26 = vld [vmem:[%s1049_s8 + $0x8] sm:$0xff]  ;;  %v208_v28 = vld [vmem:[%s1049_s8 + $0x10] sm:$0xff]  ;;  %p802_p10 = scmp.lt.s32.totalorder %s1097_s25, %s800_s23  ;;  %p803_p13 = scmp.lt.s32.totalorder %s801_s29, %s795_s27 }
  0x5d   : > { %v656_v25 = vpack.c.bf16 %v237_v24, %v236_v23  ;;  %v215_v27 = vld [vmem:[%s1049_s8 + $0x48] sm:$0xff]  ;;  %v216_v29 = vld [vmem:[%s1049_s8 + $0x50] sm:$0xff]  ;;  %v209_v30 = vld [vmem:[%s1049_s8 + $0x18] sm:$0xff]  ;;  %p798_p8 = pneg %p797_p6 }
  0x5e   : > { %635 = vmatpush3.bf16.msra.mxu0 %v632_v5  ;;  %669 = vmatpush3.bf16.msra.mxu1 %v632_v5  ;;  %v217_v31 = vld [vmem:[%s1049_s8 + $0x58] sm:$0xff]  ;;  %v210_v32 = vld [vmem:[%s1049_s8 + $0x20] sm:$0xff]  ;;  %v211_v34 = vld [vmem:[%s1049_s8 + $0x28] sm:$0xff]  ;;  %p804_p3 = por %p803_p13, %p802_p10 }
  0x5f   : > { %637 = vmatprep.subr.bf16.mxu0 %v636_v8  ;;  %662 = vmatprep.subr.bf16.mxu1 %v636_v8  ;;  %v218_v33 = vld [vmem:[%s1049_s8 + $0x60] sm:$0xff]  ;;  %v219_v35 = vld [vmem:[%s1049_s8 + $0x68] sm:$0xff]  ;;  %v212_v36 = vld [vmem:[%s1049_s8 + $0x30] sm:$0xff] }
  0x60   : > { %v220_v37 = vld [vmem:[%s1049_s8 + $0x70] sm:$0xff]  ;;  %v213_v38 = vld [vmem:[%s1049_s8 + $0x38] sm:$0xff]  ;;  %v532_v40 = vld [vmem:[%s1146_s1] ss:$0 sm:$0xff]  ;;  %p805_p7 = pnand %p804_p3, %p798_p8 }
  0x61   : > { %v221_v39 = vld [vmem:[%s1049_s8 + $0x78] sm:$0xff] }
  0x62   : > { %639 = vmatpush3.bf16.msra.mxu0 %v636_v8  ;;  %670 = vmatpush3.bf16.msra.mxu1 %v636_v8 }
  0x63   : > { %641 = vmatprep.subr.bf16.mxu0 %v640_v13  ;;  %663 = vmatprep.subr.bf16.mxu1 %v640_v13 }
  0x66   : > { %643 = vmatpush3.bf16.msra.mxu0 %v640_v13  ;;  %671 = vmatpush3.bf16.msra.mxu1 %v640_v13 }
  0x67   : > { %645 = vmatprep.subr.bf16.mxu0 %v644_v16  ;;  %664 = vmatprep.subr.bf16.mxu1 %v644_v16 }
  0x6a   : > { %647 = vmatpush3.bf16.msra.mxu0 %v644_v16  ;;  %672 = vmatpush3.bf16.msra.mxu1 %v644_v16 }
  0x6b   : > { %649 = vmatprep.subr.bf16.mxu0 %v648_v19  ;;  %665 = vmatprep.subr.bf16.mxu1 %v648_v19 }
  0x6e   : > { %651 = vmatpush3.bf16.msra.mxu0 %v648_v19  ;;  %673 = vmatpush3.bf16.msra.mxu1 %v648_v19 }
  0x6f   : > { %653 = vmatprep.subr.bf16.mxu0 %v652_v22  ;;  %666 = vmatprep.subr.bf16.mxu1 %v652_v22 }
  0x72   : > { %655 = vmatpush3.bf16.msra.mxu0 %v652_v22  ;;  %674 = vmatpush3.bf16.msra.mxu1 %v652_v22 }
  0x73   : > { %657 = vmatprep.subr.bf16.mxu0 %v656_v25  ;;  %667 = vmatprep.subr.bf16.mxu1 %v656_v25 }
  0x76   : > { %659 = vmatpush3.bf16.msra.mxu0 %v656_v25  ;;  %675 = vmatpush3.bf16.msra.mxu1 %v656_v25 }
  0x79   : > { %605 = vmatmul.mubr.f32.vlgmr.msra.gmra.mrb[0].mxu0 %v207_v26  ;;  %617 = vmatmul.mubr.f32.vlgmr.msra.gmra.mrb[0].mxu1 %v215_v27 }
  0x7a   : > { %607 = vmatprep.mubr.f32.mxu0 %v208_v28  ;;  %619 = vmatprep.mubr.f32.mxu1 %v216_v29 }
  0x7d   : > { %608 = vmatmul.mubr.f32.gmra.mrb[2].mxu0 %v209_v30  ;;  %620 = vmatmul.mubr.f32.gmra.mrb[2].mxu1 %v217_v31 }
  0x7e   : > { %610 = vmatprep.mubr.f32.mxu0 %v210_v32  ;;  %622 = vmatprep.mubr.f32.mxu1 %v218_v33 }
  0x81   : > { %611 = vmatmul.mubr.f32.gmra.mrb[4].mxu0 %v211_v34  ;;  %623 = vmatmul.mubr.f32.gmra.mrb[4].mxu1 %v219_v35 }
  0x82   : > { %613 = vmatprep.mubr.f32.mxu0 %v212_v36  ;;  %625 = vmatprep.mubr.f32.mxu1 %v220_v37 }
  0x85   : > { %614 = vmatmul.mubr.f32.gmra.mrb[6].mxu0 %v213_v38  ;;  %626 = vmatmul.mubr.f32.gmra.mrb[6].mxu1 %v221_v39 }
 0x14c   : > { %v606_v41 = vpop.f32.mrb[0].mxu0  ;;  %v618_v42 = vpop.f32.mrb[0].mxu1 }
 0x14d   : > { %v317_v43 = vadd.f32 %v606_v41, %v532_v40  ;;  %v357_v44 = vadd.f32 %v618_v42, %v532_v40  ;;  %v311_v45 = vpop.f32.mrb[1].mxu0  ;;  %v351_v46 = vpop.f32.mrb[1].mxu1 }
 0x14e   : > { %v312_v47 = vadd.f32 %v532_v40, %v311_v45  ;;  %v352_v48 = vadd.f32 %v532_v40, %v351_v46 }
 0x14f   : > { %v391_v49 = vmax.f32 %v317_v43, 0.0  ;;  %v399_v50 = vmax.f32 %v357_v44, 0.0 }
 0x150   : > { %v390_v51 = vmax.f32 %v312_v47, 0.0  ;;  %v398_v52 = vmax.f32 %v352_v48, 0.0  ;;  %v609_v53 = vpop.f32.mrb[2].mxu0  ;;  %v621_v54 = vpop.f32.mrb[2].mxu1 }
 0x151   : > { %407 = vst [vmem:[%s1076_s9 + $0x8] sm:$0xff] %v391_v49  ;;  %415 = vst [vmem:[%s1076_s9 + $0x48] sm:$0xff] %v399_v50  ;;  %v327_v55 = vadd.f32 %v609_v53, %v532_v40  ;;  %v367_v56 = vadd.f32 %v621_v54, %v532_v40  ;;  %v321_v57 = vpop.f32.mrb[3].mxu0  ;;  %v361_v58 = vpop.f32.mrb[3].mxu1 }
 0x152   : > { %406 = vst [vmem:[%s1076_s9] sm:$0xff] %v390_v51  ;;  %414 = vst [vmem:[%s1076_s9 + $0x40] sm:$0xff] %v398_v52  ;;  %v322_v59 = vadd.f32 %v532_v40, %v321_v57  ;;  %v362_v60 = vadd.f32 %v532_v40, %v361_v58 }
 0x153   : > { %v393_v61 = vmax.f32 %v327_v55, 0.0  ;;  %v401_v62 = vmax.f32 %v367_v56, 0.0 }
 0x154   : > { %v392_v63 = vmax.f32 %v322_v59, 0.0  ;;  %v400_v0 = vmax.f32 %v362_v60, 0.0  ;;  %v612_v1 = vpop.f32.mrb[4].mxu0  ;;  %v624_v2 = vpop.f32.mrb[4].mxu1 }
 0x155   : > { %409 = vst [vmem:[%s1076_s9 + $0x18] sm:$0xff] %v393_v61  ;;  %417 = vst [vmem:[%s1076_s9 + $0x58] sm:$0xff] %v401_v62  ;;  %v337_v3 = vadd.f32 %v612_v1, %v532_v40  ;;  %v377_v4 = vadd.f32 %v624_v2, %v532_v40  ;;  %v331_v5 = vpop.f32.mrb[5].mxu0  ;;  %v371_v6 = vpop.f32.mrb[5].mxu1 }
 0x156   : > { %408 = vst [vmem:[%s1076_s9 + $0x10] sm:$0xff] %v392_v63  ;;  %416 = vst [vmem:[%s1076_s9 + $0x50] sm:$0xff] %v400_v0  ;;  %v332_v7 = vadd.f32 %v532_v40, %v331_v5  ;;  %v372_v8 = vadd.f32 %v532_v40, %v371_v6 }
 0x157   : > { %v395_v9 = vmax.f32 %v337_v3, 0.0  ;;  %v403_v10 = vmax.f32 %v377_v4, 0.0 }
 0x158   : > { %v394_v11 = vmax.f32 %v332_v7, 0.0  ;;  %v402_v12 = vmax.f32 %v372_v8, 0.0  ;;  %v615_v13 = vpop.f32.mrb[6].mxu0  ;;  %v627_v14 = vpop.f32.mrb[6].mxu1 }
 0x159   : > { %411 = vst [vmem:[%s1076_s9 + $0x28] sm:$0xff] %v395_v9  ;;  %419 = vst [vmem:[%s1076_s9 + $0x68] sm:$0xff] %v403_v10  ;;  %v347_v15 = vadd.f32 %v615_v13, %v532_v40  ;;  %v387_v16 = vadd.f32 %v627_v14, %v532_v40  ;;  %v341_v17 = vpop.f32.mrb[7].mxu0  ;;  %v381_v18 = vpop.f32.mrb[7].mxu1 }
 0x15a   : > { %410 = vst [vmem:[%s1076_s9 + $0x20] sm:$0xff] %v394_v11  ;;  %418 = vst [vmem:[%s1076_s9 + $0x60] sm:$0xff] %v402_v12  ;;  %v342_v19 = vadd.f32 %v532_v40, %v341_v17  ;;  %v382_v20 = vadd.f32 %v532_v40, %v381_v18 }
 0x15b   : > { %v397_v21 = vmax.f32 %v347_v15, 0.0  ;;  %v405_v22 = vmax.f32 %v387_v16, 0.0 }
 0x15c   : > { %v396_v23 = vmax.f32 %v342_v19, 0.0  ;;  %v404_v24 = vmax.f32 %v382_v20, 0.0 }
 0x15d   : > { %413 = vst [vmem:[%s1076_s9 + $0x38] sm:$0xff] %v397_v21  ;;  %421 = vst [vmem:[%s1076_s9 + $0x78] sm:$0xff] %v405_v22 }
 0x15e   : > { %412 = vst [vmem:[%s1076_s9 + $0x30] sm:$0xff] %v396_v23  ;;  %420 = vst [vmem:[%s1076_s9 + $0x70] sm:$0xff] %v404_v24 }
 0x15f   : > { %808 = shalt.err (!%p805_p7)
}
 0x160   : > { %s809_s30 = scalar_lea.hbm %s1095_s10, 2048  ;;  %s813_s7 = scalar_lea.hbm %s1148_s3, 4096 }
 0x161   : > { %p810_p9 = scmp.ne.s32.totalorder %s1095_s10, %s809_s30  ;;  %p814_p5 = scmp.lt.u32.totalorder %s1095_s10, %s1148_s3 }
 0x162   : > { %p815_p2 = scmp.lt.u32.totalorder %s813_s7, %s809_s30  ;;  %p817_p4 = scmp.lt.u32.totalorder %s809_s30, %s1095_s10 }
 0x163   : > { %p811_p1 = pnand %p810_p9, %p988_p12 }
 0x164   : > { %p816_p11 = por %p815_p2, %p814_p5 }
 0x165   : > { %p812_p0 = pneg %p811_p1 }
 0x166   : > { %p818_p6 = por %p817_p4, %p816_p11 }
 0x168   : > { %p819_p8 = pnand %p818_p6, %p812_p0 }
 0x16a   : > { %822 = shalt.err (!%p819_p8)
}
 0x16b   : > { %s872_s20 = smov 128   ;;  %s873_s9 = smov 8  }
 0x16c   : > { %682 = dma.vmem_to_hbm [thread:$0]  (%p988_p12), %s1097_s25, 2048, %s1095_s10, %s423_s11, %s872_s20, %s872_s20, %s873_s9  }
 0x16d PF: > { %s451_s4 = sand.u32 1, %s853_s12   ;;  %p1163_p10 = scmp.ne.s32.totalorder %s1153_s19, 0 }
 0x16e   : > { %p1164_p13 = scmp.ge.s32.totalorder %s865_s15, 2  ;;  %s452_s16 = scalar_lea.sflag [#allocation4], %s451_s4 }
 0x170   : > { %p693_p3 = pnand %p1164_p13, %p1163_p10 }
 0x172   : > { %848 = dma.done.wait (!%p693_p3), %s452_s16, 2048  }
 0x173   : > { %850 = vsyncadd (!%p693_p3), %s452_s16, 4294965248  ;;  %p17_p7 = scmp.ge.s32.totalorder %s950_s24, 4   ;;  %s1165_s12 = smov %s857_s13 }
 0x174   : > { %s1166_s13 = smov %s861_s14  ;;  %s1167_s14 = smov %s984_s17 }
 0x175   : > { %s1168_s15 = smov %s950_s24  ;;  %19 = sbr.rel (!%p17_p7) target bundleno = 6 (0x6), region = 82 }
 0x17c   :  { %457 = vsyncpa [#allocation3], 1 }
 0x17d   :  { %459 = vsyncpa [#allocation3 + $0x1], 1 }
 0x17e   :  { %460 = vsyncpa [#allocation6], 1 }
 0x17f   :  { %462 = vsyncpa [#allocation6 + $0x1], 1 }
 0x180   :  { %463 = vsyncpa [#allocation4], 1 }
 0x181   :  { %465 = vsyncpa [#allocation4 + $0x1], 1 }

</bundles_post_ra>
